<compile_context>
chip_gen: v7x
topology: tpu7x:2x2x1
jax: 0.10.0
libtpu: 0.0.40
codegen_flags: <defaults>
</compile_context>

<pallas_src>
import functools

import jax
import jax.numpy as jnp
from jax.experimental import pallas as pl
from jax.experimental.pallas import tpu as pltpu


def _make_ssn_kernel(act_dtype):
    """Builds the fused kernel; act_dtype = bf16 on v6e/v7x, f32 on v5e."""

    def kernel(x_ref, wcat_ref, bcat_ref, w2_ref, b2_ref, wd_ref, bd_ref,
               wp_ref, bp_ref, out_ref):
        # x_ref   : (3, E, TB) f32   -- batch on the lane axis
        # wcat_ref: (E+M, E) bf16    -- [g_gate ; first_to_metaphor] (out, in)
        # bcat_ref: (E+M, 1) f32
        # w2_ref  : (M, E) bf16, b2_ref: (M, 1) f32
        # wd_ref  : (D, M) bf16, bd_ref: (D, 1) f32
        # wp_ref  : (D, 1) f32,  bp_ref: (1, 1) f32
        # out_ref : (1, TB) f32      -- lane-dense output tile
        e = wcat_ref.shape[1]

        x1t = x_ref[0]          # (E, TB)  free major-axis indexing, no concat
        x2t = x_ref[1]
        x3t = x_ref[2]

        wcat = wcat_ref[...]
        bcat = bcat_ref[...]
        w2 = w2_ref[...]
        b2 = b2_ref[...]
        wd = wd_ref[...]
        bd = bd_ref[...]
        wp = wp_ref[...]
        bp = bp_ref[...]

        def branch(a_t, b_t):
            # Fused gate + first_to_metaphor: one MXU push, lane-dense output.
            gz = (jnp.dot(wcat, a_t.astype(jnp.bfloat16),
                          preferred_element_type=jnp.float32) + bcat
                  ).astype(act_dtype)                       # (E+M, TB)
            gate = jax.nn.sigmoid(gz[:e])                   # (E, TB) sublane slice
            z1 = jnp.tanh(gz[e:])                           # (M, TB)
            b_gated = gate * b_t.astype(act_dtype)          # (E, TB)
            z2 = jnp.tanh((jnp.dot(w2, b_gated.astype(jnp.bfloat16),
                                   preferred_element_type=jnp.float32) + b2
                           ).astype(act_dtype))             # (M, TB)
            m = z1 * z2                                     # (M, TB)
            d = jnp.tanh((jnp.dot(wd, m.astype(jnp.bfloat16),
                                  preferred_element_type=jnp.float32) + bd
                          ).astype(act_dtype))              # (D, TB)
            # to_prediction on VPU + XLU (sublane reduce), f32; no MXU.
            logit = jnp.sum(wp * d.astype(jnp.float32),
                            axis=0, keepdims=True) + bp     # (1, TB)
            return logit

        l1 = branch(x1t, x2t)   # ssn(x1, x2)
        l2 = branch(x2t, x3t)   # ssn(x2, x3)
        # sigmoid is monotone: max(sigmoid(l1), sigmoid(l2)) == sigmoid(max).
        out_ref[...] = jax.nn.sigmoid(jnp.maximum(l1, l2))

    return kernel


def default_act_dtype():
    """bf16 activations on v6e/v7x (bf16 EUP/VALU); f32 on v5e / unknown."""
    try:
        kind = jax.devices()[0].device_kind.lower()
    except Exception:
        return jnp.float32
    if ("v6" in kind) or ("v7" in kind) or ("tpu7" in kind):
        return jnp.bfloat16
    return jnp.float32


def prepare_params(p):
    """One-time (hoisted) fusion/cast of PyTorch-layout params.

    Input weights are (out, in), biases (out,).  Kernel layout keeps (out, in)
    for the transposed dataflow, fuses g_gate + first_to_metaphor, stores
    weights in bf16 and biases as f32 columns.
    """
    f32 = jnp.float32
    return dict(
        wcat=jnp.concatenate([p["wg"], p["w1"]], axis=0).astype(jnp.bfloat16),
        bcat=jnp.concatenate([p["bg"], p["b1"]], axis=0)[:, None].astype(f32),
        w2=p["w2"].astype(jnp.bfloat16),
        b2=p["b2"][:, None].astype(f32),
        wd=p["wd"].astype(jnp.bfloat16),
        bd=p["bd"][:, None].astype(f32),
        wp=jnp.transpose(p["wp"]).astype(f32),      # (1, D) -> (D, 1)
        bp=p["bp"].reshape(1, 1).astype(f32),
    )


def _pick_tile(batch, block_batch):
    """Pad batch to a multiple of 128 only, and pick tb (multiple of 128) that
    divides the padded batch, fits block_batch, and gives >=2 tiles when
    possible (so v7x's second TensorCore is used)."""
    b_pad = pl.cdiv(batch, 128) * 128
    q = b_pad // 128
    max_g = max(1, block_batch // 128)
    want_tiles = 2 if q >= 2 else 1
    g_best = 1
    for g in range(min(q, max_g), 0, -1):
        if q % g == 0 and (q // g) >= want_tiles:
            g_best = g
            break
    tb = 128 * g_best
    return b_pad, tb, b_pad // tb


def base_ssn_forward(x, kp, *, block_batch=1024, act_dtype=jnp.float32):
    """x: (3, B, E) float32, kp: prepare_params(...).  Returns (B, 1) f32
    (eval-mode forward of BaseSSN)."""
    seq, batch, e = x.shape
    assert seq == 3, "forward consumes embedded[0], embedded[1], embedded[2]"
    assert block_batch >= 128

    em = kp["wcat"].shape[0]          # E + M
    msz = kp["w2"].shape[0]
    dsz = kp["wd"].shape[0]
    assert kp["wcat"].shape[1] == e

    b_pad, tb, n_tiles = _pick_tile(batch, block_batch)

    # Batch onto the lane axis; pad (<=127 lanes) fuses with the transpose
    # under jit.
    x_t = jnp.transpose(x, (0, 2, 1))               # (3, E, B)
    if b_pad != batch:
        x_t = jnp.pad(x_t, ((0, 0), (0, 0), (0, b_pad - batch)))

    # Advisory cost estimate (2 branches per batch row).
    flops_row = 2 * 2 * (e * em + e * msz + msz * dsz + dsz)
    cost = pl.CostEstimate(
        flops=int(b_pad * flops_row),
        transcendentals=int(b_pad * (2 * (e + 2 * msz + dsz) + 1)),
        bytes_accessed=int(x.size * 4 + b_pad * 4 +
                           2 * (em * e + msz * e + dsz * msz) +
                           4 * (em + msz + 2 * dsz + 1)),
    )

    out_row = pl.pallas_call(
        _make_ssn_kernel(act_dtype),
        out_shape=jax.ShapeDtypeStruct((1, b_pad), jnp.float32),
        grid=(n_tiles,),
        in_specs=[
            pl.BlockSpec((3, e, tb), lambda i: (0, 0, i)),    # x tile (lane-dense)
            pl.BlockSpec((em, e), lambda i: (0, 0)),          # [Wg ; W1] bf16
            pl.BlockSpec((em, 1), lambda i: (0, 0)),          # [bg ; b1]
            pl.BlockSpec((msz, e), lambda i: (0, 0)),         # W2 bf16
            pl.BlockSpec((msz, 1), lambda i: (0, 0)),         # b2
            pl.BlockSpec((dsz, msz), lambda i: (0, 0)),       # Wd bf16
            pl.BlockSpec((dsz, 1), lambda i: (0, 0)),         # bd
            pl.BlockSpec((dsz, 1), lambda i: (0, 0)),         # wp column (f32)
            pl.BlockSpec((1, 1), lambda i: (0, 0)),           # bp
        ],
        out_specs=pl.BlockSpec((1, tb), lambda i: (0, i)),    # lane-dense out
        compiler_params=pltpu.CompilerParams(
            dimension_semantics=("parallel",),
            vmem_limit_bytes=32 * 1024 * 1024,
        ),
        cost_estimate=cost,
    )(x_t, kp["wcat"], kp["bcat"], kp["w2"], kp["b2"],
      kp["wd"], kp["bd"], kp["wp"], kp["bp"])

    return out_row[0, :batch].reshape(batch, 1)


def init_params(key, embedding_size, metaphor_size, d_size):
    """PyTorch-style init: weights (out, in), biases (out,), U(-1/sqrt(in), +)."""
    ks = jax.random.split(key, 10)

    def lin(kw, kb, fan_in, fan_out):
        bound = 1.0 / jnp.sqrt(fan_in)
        w = jax.random.uniform(kw, (fan_out, fan_in), jnp.float32, -bound, bound)
        b = jax.random.uniform(kb, (fan_out,), jnp.float32, -bound, bound)
        return w, b

    wg, bg = lin(ks[0], ks[1], embedding_size, embedding_size)
    w1, b1 = lin(ks[2], ks[3], embedding_size, metaphor_size)
    w2, b2 = lin(ks[4], ks[5], embedding_size, metaphor_size)
    wd, bd = lin(ks[6], ks[7], metaphor_size, d_size)
    wp, bp = lin(ks[8], ks[9], d_size, 1)
    return dict(wg=wg, bg=bg, w1=w1, b1=b1, w2=w2, b2=b2,
                wd=wd, bd=bd, wp=wp, bp=bp)


def base_ssn_reference(x, p):
    """Pure-JAX eval-mode forward mirroring the kernel's matmul numerics
    (bf16 weights / f32 accumulation; final prediction layer in f32)."""
    def lin_bf16(a, w, b):
        return jnp.dot(a.astype(jnp.bfloat16), w.T.astype(jnp.bfloat16),
                       preferred_element_type=jnp.float32) + b

    def ssn(x1, x2):
        x2_ = jax.nn.sigmoid(lin_bf16(x1, p["wg"], p["bg"])) * x2
        z1 = jnp.tanh(lin_bf16(x1, p["w1"], p["b1"]))
        z2 = jnp.tanh(lin_bf16(x2_, p["w2"], p["b2"]))
        m = z1 * z2
        d = jnp.tanh(lin_bf16(m, p["wd"], p["bd"]))
        return jax.nn.sigmoid(jnp.dot(d, p["wp"].T) + p["bp"])

    return jnp.maximum(ssn(x[0], x[1]), ssn(x[1], x[2]))


if __name__ == "__main__":
    embedding_size = 32
    metaphor_size = 16
    d_size = 8
    batch = 512      # -> tb=256, 2 parallel grid tiles (both v7x TCs busy)
    seq = 3          # forward consumes embedded[0], embedded[1], embedded[2]

    key = jax.random.PRNGKey(0)
    k_x, k_p = jax.random.split(key)
    x = jax.random.normal(k_x, (seq, batch, embedding_size), jnp.float32)
    params = init_params(k_p, embedding_size, metaphor_size, d_size)

    act_dtype = default_act_dtype()          # bf16 on v6e/v7x, f32 on v5e
    kp = prepare_params(params)              # hoisted out of the per-call path
    fwd = jax.jit(functools.partial(base_ssn_forward,
                                    block_batch=1024, act_dtype=act_dtype))

    out = jax.block_until_ready(fwd(x, kp))

    ref = base_ssn_reference(x, params)
    assert out.shape == (batch, 1), out.shape
    if act_dtype == jnp.float32:
        atol, rtol = 2e-3, 2e-3
    else:
        # bf16 activations: outputs are sigmoids in (0, 1); allow ~1-2% drift.
        atol, rtol = 5e-2, 0.0
    max_err = float(jnp.max(jnp.abs(out - ref)))
    assert jnp.allclose(out, ref, atol=atol, rtol=rtol), max_err

    print("KERNEL_OK")
</pallas_src>

<mosaic_0001>
module attributes {stable_mosaic.version = 11 : i64} {
  func.func @kernel(%arg0: i32, %arg1: memref<3x32x256xf32, #tpu.memory_space<vmem>>, %arg2: memref<48x32xbf16, #tpu.memory_space<vmem>>, %arg3: memref<48x1xf32, #tpu.memory_space<vmem>>, %arg4: memref<16x32xbf16, #tpu.memory_space<vmem>>, %arg5: memref<16x1xf32, #tpu.memory_space<vmem>>, %arg6: memref<8x16xbf16, #tpu.memory_space<vmem>>, %arg7: memref<8x1xf32, #tpu.memory_space<vmem>>, %arg8: memref<8x1xf32, #tpu.memory_space<vmem>>, %arg9: memref<1x1xf32, #tpu.memory_space<vmem>>, %arg10: memref<1x256xf32, #tpu.memory_space<vmem>>) attributes {dimension_semantics = [#tpu.dimension_semantics<parallel>], iteration_bounds = array<i64: 2>, scalar_prefetch = 0 : i64, scratch_operands = 0 : i64, tpu.core_type = #tpu.core_type<tc>, window_params = [{transform_indices = @transform_0, window_bounds = array<i64: 3, 32, 256>}, {pipeline_mode = #tpu.pipeline_mode<synchronous>, transform_indices = @transform_1, window_bounds = array<i64: 48, 32>}, {pipeline_mode = #tpu.pipeline_mode<synchronous>, transform_indices = @transform_2, window_bounds = array<i64: 48, 1>}, {pipeline_mode = #tpu.pipeline_mode<synchronous>, transform_indices = @transform_3, window_bounds = array<i64: 16, 32>}, {pipeline_mode = #tpu.pipeline_mode<synchronous>, transform_indices = @transform_4, window_bounds = array<i64: 16, 1>}, {pipeline_mode = #tpu.pipeline_mode<synchronous>, transform_indices = @transform_5, window_bounds = array<i64: 8, 16>}, {pipeline_mode = #tpu.pipeline_mode<synchronous>, transform_indices = @transform_6, window_bounds = array<i64: 8, 1>}, {pipeline_mode = #tpu.pipeline_mode<synchronous>, transform_indices = @transform_7, window_bounds = array<i64: 8, 1>}, {pipeline_mode = #tpu.pipeline_mode<synchronous>, transform_indices = @transform_8, window_bounds = array<i64: 1, 1>}, {transform_indices = @transform_9, window_bounds = array<i64: 1, 256>}]} {
    %c0 = arith.constant 0 : index
    %c0_0 = arith.constant 0 : index
    %c0_1 = arith.constant 0 : index
    %0 = vector.load %arg1[%c0, %c0_0, %c0_1] : memref<3x32x256xf32, #tpu.memory_space<vmem>>, vector<1x32x256xf32>
    %1 = vector.shape_cast %0 : vector<1x32x256xf32> to vector<32x256xf32>
    %c1 = arith.constant 1 : index
    %c0_2 = arith.constant 0 : index
    %c0_3 = arith.constant 0 : index
    %2 = vector.load %arg1[%c1, %c0_2, %c0_3] : memref<3x32x256xf32, #tpu.memory_space<vmem>>, vector<1x32x256xf32>
    %3 = vector.shape_cast %2 : vector<1x32x256xf32> to vector<32x256xf32>
    %c2 = arith.constant 2 : index
    %c0_4 = arith.constant 0 : index
    %c0_5 = arith.constant 0 : index
    %4 = vector.load %arg1[%c2, %c0_4, %c0_5] : memref<3x32x256xf32, #tpu.memory_space<vmem>>, vector<1x32x256xf32>
    %5 = vector.shape_cast %4 : vector<1x32x256xf32> to vector<32x256xf32>
    %c0_6 = arith.constant 0 : index
    %c0_7 = arith.constant 0 : index
    %6 = vector.load %arg2[%c0_6, %c0_7] : memref<48x32xbf16, #tpu.memory_space<vmem>>, vector<48x32xbf16>
    %c0_8 = arith.constant 0 : index
    %c0_9 = arith.constant 0 : index
    %7 = vector.load %arg3[%c0_8, %c0_9] : memref<48x1xf32, #tpu.memory_space<vmem>>, vector<48x1xf32>
    %c0_10 = arith.constant 0 : index
    %c0_11 = arith.constant 0 : index
    %8 = vector.load %arg4[%c0_10, %c0_11] : memref<16x32xbf16, #tpu.memory_space<vmem>>, vector<16x32xbf16>
    %c0_12 = arith.constant 0 : index
    %c0_13 = arith.constant 0 : index
    %9 = vector.load %arg5[%c0_12, %c0_13] : memref<16x1xf32, #tpu.memory_space<vmem>>, vector<16x1xf32>
    %c0_14 = arith.constant 0 : index
    %c0_15 = arith.constant 0 : index
    %10 = vector.load %arg6[%c0_14, %c0_15] : memref<8x16xbf16, #tpu.memory_space<vmem>>, vector<8x16xbf16>
    %c0_16 = arith.constant 0 : index
    %c0_17 = arith.constant 0 : index
    %11 = vector.load %arg7[%c0_16, %c0_17] : memref<8x1xf32, #tpu.memory_space<vmem>>, vector<8x1xf32>
    %c0_18 = arith.constant 0 : index
    %c0_19 = arith.constant 0 : index
    %12 = vector.load %arg8[%c0_18, %c0_19] : memref<8x1xf32, #tpu.memory_space<vmem>>, vector<8x1xf32>
    %c0_20 = arith.constant 0 : index
    %c0_21 = arith.constant 0 : index
    %13 = vector.load %arg9[%c0_20, %c0_21] : memref<1x1xf32, #tpu.memory_space<vmem>>, vector<1x1xf32>
    %14 = arith.truncf %1 : vector<32x256xf32> to vector<32x256xbf16>
    %cst = arith.constant dense<0.000000e+00> : vector<48x256xf32>
    %15 = tpu.matmul %6, %14, %cst {dimension_numbers = #tpu.dot_dimension_numbers<[1], [0], [0], [1], [0, 0, 1, 1], [], []>} : vector<48x32xbf16>, vector<32x256xbf16>, vector<48x256xf32> -> vector<48x256xf32>
    %16 = vector.broadcast %7 : vector<48x1xf32> to vector<48x256xf32>
    %17 = arith.addf %15, %16 : vector<48x256xf32>
    %18 = vector.extract_strided_slice %17 {offsets = [0, 0], sizes = [32, 256], strides = [1, 1]} : vector<48x256xf32> to vector<32x256xf32>
    %19 = arith.negf %18 : vector<32x256xf32>
    %20 = math.exp %19 : vector<32x256xf32>
    %cst_22 = arith.constant 1.000000e+00 : f32
    %21 = vector.broadcast %cst_22 : f32 to vector<32x256xf32>
    %22 = arith.addf %21, %20 : vector<32x256xf32>
    %23 = arith.divf %21, %22 : vector<32x256xf32>
    %24 = vector.extract_strided_slice %17 {offsets = [32, 0], sizes = [16, 256], strides = [1, 1]} : vector<48x256xf32> to vector<16x256xf32>
    %25 = math.tanh %24 : vector<16x256xf32>
    %26 = arith.mulf %23, %3 : vector<32x256xf32>
    %27 = arith.truncf %26 : vector<32x256xf32> to vector<32x256xbf16>
    %cst_23 = arith.constant dense<0.000000e+00> : vector<16x256xf32>
    %28 = tpu.matmul %8, %27, %cst_23 {dimension_numbers = #tpu.dot_dimension_numbers<[1], [0], [0], [1], [0, 0, 1, 1], [], []>} : vector<16x32xbf16>, vector<32x256xbf16>, vector<16x256xf32> -> vector<16x256xf32>
    %29 = vector.broadcast %9 : vector<16x1xf32> to vector<16x256xf32>
    %30 = arith.addf %28, %29 : vector<16x256xf32>
    %31 = math.tanh %30 : vector<16x256xf32>
    %32 = arith.mulf %25, %31 : vector<16x256xf32>
    %33 = arith.truncf %32 : vector<16x256xf32> to vector<16x256xbf16>
    %cst_24 = arith.constant dense<0.000000e+00> : vector<8x256xf32>
    %34 = tpu.matmul %10, %33, %cst_24 {dimension_numbers = #tpu.dot_dimension_numbers<[1], [0], [0], [1], [0, 0, 1, 1], [], []>} : vector<8x16xbf16>, vector<16x256xbf16>, vector<8x256xf32> -> vector<8x256xf32>
    %35 = vector.broadcast %11 : vector<8x1xf32> to vector<8x256xf32>
    %36 = arith.addf %34, %35 : vector<8x256xf32>
    %37 = math.tanh %36 : vector<8x256xf32>
    %38 = vector.broadcast %12 : vector<8x1xf32> to vector<8x256xf32>
    %39 = arith.mulf %38, %37 : vector<8x256xf32>
    %cst_25 = arith.constant dense<0.000000e+00> : vector<256xf32>
    %40 = vector.multi_reduction <add>, %39, %cst_25 [0] : vector<8x256xf32> to vector<256xf32>
    %41 = vector.shape_cast %40 : vector<256xf32> to vector<1x256xf32>
    %42 = vector.broadcast %13 : vector<1x1xf32> to vector<1x256xf32>
    %43 = arith.addf %41, %42 : vector<1x256xf32>
    %44 = arith.truncf %3 : vector<32x256xf32> to vector<32x256xbf16>
    %cst_26 = arith.constant dense<0.000000e+00> : vector<48x256xf32>
    %45 = tpu.matmul %6, %44, %cst_26 {dimension_numbers = #tpu.dot_dimension_numbers<[1], [0], [0], [1], [0, 0, 1, 1], [], []>} : vector<48x32xbf16>, vector<32x256xbf16>, vector<48x256xf32> -> vector<48x256xf32>
    %46 = vector.broadcast %7 : vector<48x1xf32> to vector<48x256xf32>
    %47 = arith.addf %45, %46 : vector<48x256xf32>
    %48 = vector.extract_strided_slice %47 {offsets = [0, 0], sizes = [32, 256], strides = [1, 1]} : vector<48x256xf32> to vector<32x256xf32>
    %49 = arith.negf %48 : vector<32x256xf32>
    %50 = math.exp %49 : vector<32x256xf32>
    %cst_27 = arith.constant 1.000000e+00 : f32
    %51 = vector.broadcast %cst_27 : f32 to vector<32x256xf32>
    %52 = arith.addf %51, %50 : vector<32x256xf32>
    %53 = arith.divf %51, %52 : vector<32x256xf32>
    %54 = vector.extract_strided_slice %47 {offsets = [32, 0], sizes = [16, 256], strides = [1, 1]} : vector<48x256xf32> to vector<16x256xf32>
    %55 = math.tanh %54 : vector<16x256xf32>
    %56 = arith.mulf %53, %5 : vector<32x256xf32>
    %57 = arith.truncf %56 : vector<32x256xf32> to vector<32x256xbf16>
    %cst_28 = arith.constant dense<0.000000e+00> : vector<16x256xf32>
    %58 = tpu.matmul %8, %57, %cst_28 {dimension_numbers = #tpu.dot_dimension_numbers<[1], [0], [0], [1], [0, 0, 1, 1], [], []>} : vector<16x32xbf16>, vector<32x256xbf16>, vector<16x256xf32> -> vector<16x256xf32>
    %59 = vector.broadcast %9 : vector<16x1xf32> to vector<16x256xf32>
    %60 = arith.addf %58, %59 : vector<16x256xf32>
    %61 = math.tanh %60 : vector<16x256xf32>
    %62 = arith.mulf %55, %61 : vector<16x256xf32>
    %63 = arith.truncf %62 : vector<16x256xf32> to vector<16x256xbf16>
    %cst_29 = arith.constant dense<0.000000e+00> : vector<8x256xf32>
    %64 = tpu.matmul %10, %63, %cst_29 {dimension_numbers = #tpu.dot_dimension_numbers<[1], [0], [0], [1], [0, 0, 1, 1], [], []>} : vector<8x16xbf16>, vector<16x256xbf16>, vector<8x256xf32> -> vector<8x256xf32>
    %65 = vector.broadcast %11 : vector<8x1xf32> to vector<8x256xf32>
    %66 = arith.addf %64, %65 : vector<8x256xf32>
    %67 = math.tanh %66 : vector<8x256xf32>
    %68 = vector.broadcast %12 : vector<8x1xf32> to vector<8x256xf32>
    %69 = arith.mulf %68, %67 : vector<8x256xf32>
    %cst_30 = arith.constant dense<0.000000e+00> : vector<256xf32>
    %70 = vector.multi_reduction <add>, %69, %cst_30 [0] : vector<8x256xf32> to vector<256xf32>
    %71 = vector.shape_cast %70 : vector<256xf32> to vector<1x256xf32>
    %72 = vector.broadcast %13 : vector<1x1xf32> to vector<1x256xf32>
    %73 = arith.addf %71, %72 : vector<1x256xf32>
    %74 = arith.maximumf %43, %73 : vector<1x256xf32>
    %75 = arith.negf %74 : vector<1x256xf32>
    %76 = math.exp %75 : vector<1x256xf32>
    %cst_31 = arith.constant 1.000000e+00 : f32
    %77 = vector.broadcast %cst_31 : f32 to vector<1x256xf32>
    %78 = arith.addf %77, %76 : vector<1x256xf32>
    %79 = arith.divf %77, %78 : vector<1x256xf32>
    %c0_32 = arith.constant 0 : index
    %c0_33 = arith.constant 0 : index
    %80 = vector.load %arg10[%c0_32, %c0_33] : memref<1x256xf32, #tpu.memory_space<vmem>>, vector<1x256xf32>
    tpu.vector_store %arg10[%c0_32, %c0_33], %79 {strides = array<i32>} : memref<1x256xf32, #tpu.memory_space<vmem>>, vector<1x256xf32>,
    return
  }
  func.func @transform_0(%arg0: i32) -> (i32, i32, i32) {
    %c0_i32 = arith.constant 0 : i32
    %c0_i32_0 = arith.constant 0 : i32
    %c0_i32_1 = arith.constant 0 : i32
    return %c0_i32, %c0_i32_0, %arg0 : i32, i32, i32
  }
  func.func @transform_1(%arg0: i32) -> (i32, i32) {
    %c0_i32 = arith.constant 0 : i32
    %c0_i32_0 = arith.constant 0 : i32
    %c0_i32_1 = arith.constant 0 : i32
    return %c0_i32, %c0_i32_0 : i32, i32
  }
  func.func @transform_2(%arg0: i32) -> (i32, i32) {
    %c0_i32 = arith.constant 0 : i32
    %c0_i32_0 = arith.constant 0 : i32
    %c0_i32_1 = arith.constant 0 : i32
    return %c0_i32, %c0_i32_0 : i32, i32
  }
  func.func @transform_3(%arg0: i32) -> (i32, i32) {
    %c0_i32 = arith.constant 0 : i32
    %c0_i32_0 = arith.constant 0 : i32
    %c0_i32_1 = arith.constant 0 : i32
    return %c0_i32, %c0_i32_0 : i32, i32
  }
  func.func @transform_4(%arg0: i32) -> (i32, i32) {
    %c0_i32 = arith.constant 0 : i32
    %c0_i32_0 = arith.constant 0 : i32
    %c0_i32_1 = arith.constant 0 : i32
    return %c0_i32, %c0_i32_0 : i32, i32
  }
  func.func @transform_5(%arg0: i32) -> (i32, i32) {
    %c0_i32 = arith.constant 0 : i32
    %c0_i32_0 = arith.constant 0 : i32
    %c0_i32_1 = arith.constant 0 : i32
    return %c0_i32, %c0_i32_0 : i32, i32
  }
  func.func @transform_6(%arg0: i32) -> (i32, i32) {
    %c0_i32 = arith.constant 0 : i32
    %c0_i32_0 = arith.constant 0 : i32
    %c0_i32_1 = arith.constant 0 : i32
    return %c0_i32, %c0_i32_0 : i32, i32
  }
  func.func @transform_7(%arg0: i32) -> (i32, i32) {
    %c0_i32 = arith.constant 0 : i32
    %c0_i32_0 = arith.constant 0 : i32
    %c0_i32_1 = arith.constant 0 : i32
    return %c0_i32, %c0_i32_0 : i32, i32
  }
  func.func @transform_8(%arg0: i32) -> (i32, i32) {
    %c0_i32 = arith.constant 0 : i32
    %c0_i32_0 = arith.constant 0 : i32
    %c0_i32_1 = arith.constant 0 : i32
    return %c0_i32, %c0_i32_0 : i32, i32
  }
  func.func @transform_9(%arg0: i32) -> (i32, i32) {
    %c0_i32 = arith.constant 0 : i32
    %c0_i32_0 = arith.constant 0 : i32
    return %c0_i32, %arg0 : i32, i32
  }
}

</mosaic_0001>

<bundles_post_ra>
// kernel: base_ssn_forward.1
= control target key start
LH: loop header
LB: loop body
LE: loop exit
PB: predicated region body
PF: predicated region fallthrough
CT: control target
= control target key end

     0   :  { %s1853_s0 = inlined_call_operand.hbm [shape: f32[3,32,512], index: 0, kind: input, shape index: {}]   ;;  %s1854_s1 = inlined_call_operand.vmem [shape: bf16[48,32], index: 1, kind: input, shape index: {}]   ;;  %s1855_s2 = inlined_call_operand.vmem [shape: f32[48,1], index: 2, kind: input, shape index: {}]   ;;  %s1856_s3 = inlined_call_operand.vmem [shape: bf16[16,32], index: 3, kind: input, shape index: {}]   ;;  %s1857_s4 = inlined_call_operand.vmem [shape: f32[16,1], index: 4, kind: input, shape index: {}]   ;;  %s1858_s5 = inlined_call_operand.vmem [shape: bf16[8,16], index: 5, kind: input, shape index: {}]   ;;  %s1859_s6 = inlined_call_operand.vmem [shape: f32[8,1], index: 6, kind: input, shape index: {}]   ;;  %s1860_s7 = inlined_call_operand.vmem [shape: f32[8,1], index: 7, kind: input, shape index: {}]   ;;  %s1861_s8 = inlined_call_operand.<no memory space> [shape: f32[1,1], index: 8, kind: input, shape index: {}]   ;;  %s1862_s9 = inlined_call_operand.hbm [shape: f32[1,512], index: 9, kind: output, shape index: {}]  }
   0x1   :  { %v14_v0 = vstv %s1861_s8 }
   0x2   :  { %15 = vst [vmem:[#allocation2] sm:$0x1] %v14_v0 }
   0x3   :  { %16 = vsyncpa [#allocation4], 0 }
   0x4   :  { %18 = vsyncpa [#allocation4 + $0x1], 0 }
   0x5   :  { %19 = vsyncpa [#allocation5], 0 }
   0x6   :  { %21 = vsyncpa [#allocation5 + $0x1], 0  ;;  %s1497_s11 = smov 0   ;;  %s1499_s12 = smov 0  }
   0x7   :  { %s1501_s13 = smov 0   ;;  %s1503_s14 = smov 0  }
   0x8 LB: > { %s1518_s8 = sadd.s32 4294967295, %s1435_s14   ;;  %s1106_s15 = sadd.s32 4294967294, %s1435_s14   ;;  %s1435_s14 = sphi %s1503_s14, %s1875_s14   ;;  %s1431_s13 = sphi %s1501_s13, %s1874_s13   ;;  %s1427_s12 = sphi %s1499_s12, %s1873_s12   ;;  %s1423_s11 = sphi %s1497_s11, %s1872_s11  }
   0x9   : > { %s1522_s16 = sadd.s32 1, %s1435_s14   ;;  %s34_s17 = sadd.s32 1, %s1431_s13 }
   0xa   : > { %s31_s18 = ssub.s32 %s1435_s14, %s1522_s16  ;;  %p41_p0 = scmp.ne.s32.totalorder %s1431_s13, %s1427_s12 }
   0xb   : > { %p32_p1 = scmp.eq.s32.totalorder %s31_s18, 0  ;;  %p42_p2 = scmp.eq.s32.totalorder %s1435_s14, 0 }
   0xc   : > { %p47_p3 = scmp.ne.s32.totalorder %s1427_s12, %s1423_s11  ;;  %p48_p4 = scmp.eq.s32.totalorder %s1518_s8, 0 }
   0xd   : > { %s1534_s19 = scalar_select %p32_p1, %s1431_s13, %s34_s17  }
   0xe   : > { %p43_p5 = por %p42_p2, %p41_p0  ;;  %p1536_p6 = por %p48_p4, %p47_p3 }
   0xf   : > { %p239_p7 = scmp.eq.s32.totalorder %s1518_s8, 1  ;;  %p245_p8 = scmp.eq.s32.totalorder %s1106_s15, 1 }
  0x10   : > { %p1182_p10 = scmp.lt.s32.totalorder %s1435_s14, 2  ;;  %s289_s23 = sand.u32 1, %s1431_s13  }
  0x11   : > { %p1543_p11 = por %p239_p7, %p41_p0  ;;  %p1547_p12 = por %p245_p8, %p47_p3 }
  0x12   : > { %s1166_s24 = sshll.u32 %s1435_s14, 8  ;;  %s1168_s25 = smul.u32 192, %s289_s23 }
  0x13   : > { %s1865_s21 = scalar_select %p1543_p11, 1, 0 }
  0x14   : > { %s1866_s22 = scalar_select %p1547_p12, 1, 0 }
  0x15   : > { %s1556_s28 = scalar_lea.hbm %s1853_s0, %s1166_s24  ;;  %p1558_p13 = pnand %p1182_p10, %p43_p5 }
  0x16   : > { %s293_s30 = scalar_lea.vmem [#allocation3], %s1168_s25  ;;  %s1565_s15 = scalar_lea.sflag [#allocation4], %s289_s23 }
  0x17   : > { %s300_s10 = sshll.u32 %s293_s30, 4  ;;  %s1339_s17 = scalar_lea.hbm %s1556_s28, 3072  ;;  %s1562_s10 = int_to_ptr.vmem [resolvable:$true] %s300_s10 }
  0x18   : > { %p1340_p1 = scmp.ne.s32.totalorder %s1556_s28, %s1339_s17  ;;  %p1341_p2 = pneg %p1558_p13 }
  0x19   : > { %s1344_s26 = scalar_lea.hbm %s1853_s0, 6144  ;;  %p1345_p5 = scmp.lt.u32.totalorder %s1556_s28, %s1853_s0 }
  0x1a   : > { %p1342_p3 = pnand %p1341_p2, %p1340_p1  ;;  %p1346_p7 = scmp.lt.u32.totalorder %s1344_s26, %s1339_s17 }
  0x1b   : > { %p1348_p10 = scmp.lt.u32.totalorder %s1339_s17, %s1556_s28 }
  0x1c   : > { %p1343_p4 = pneg %p1342_p3  ;;  %p1347_p8 = por %p1346_p7, %p1345_p5 }
  0x1e   : > { %p1349_p9 = por %p1348_p10, %p1347_p8 }
  0x20   : > { %p1350_p0 = pnand %p1349_p9, %p1343_p4 }
  0x22   : > { %1353 = shalt.err (!%p1350_p0)
}
  0x23   : > { %s1354_s23 = scalar_lea.vmem %s1562_s10, 3072  ;;  %s1437_s30 = smov [#allocation3]  }
  0x24   : > { %p1355_p1 = scmp.ne.s32.totalorder %s1562_s10, %s1354_s23  ;;  %s1359_s18 = sshll.u32 %s1437_s30, 4  ;;  %s1360_s18 = int_to_ptr.vmem [resolvable:$false] %s1359_s18 }
  0x25   : > { %s1361_s24 = scalar_lea.vmem %s1360_s18, 6144  ;;  %p1362_p11 = scmp.lt.s32.totalorder %s1562_s10, %s1360_s18 }
  0x26   : > { %p1357_p3 = pnand %p1355_p1, %p1341_p2  ;;  %p1363_p5 = scmp.lt.s32.totalorder %s1361_s24, %s1354_s23 }
  0x28   : > { %p1358_p12 = pneg %p1357_p3  ;;  %p1364_p7 = por %p1363_p5, %p1362_p11 }
  0x2a   : > { %p1365_p8 = pnand %p1364_p7, %p1358_p12 }
  0x2c   : > { %1368 = shalt.err (!%p1365_p8)
}
  0x2d   : > { %s1438_s17 = smov 512   ;;  %s1439_s26 = smov 256  }
  0x2e   : > { %s1440_s27 = smov 16   ;;  %p308_p9 = scmp.lt.s32.totalorder %s1435_s14, 3 }
  0x2f   : > { %1177 = dma.hbm_to_vmem [thread:$0]  (!%p1558_p13), %s1556_s28, 3072, %s1562_s10, %s1565_s15, %s1438_s17, %s1439_s26, %s1440_s27  }
  0x30   : > { %p1868_p0 = scmp.ge.s32.totalorder %s1435_s14, 1 }
  0x32   : > { %p309_p2 = pnand %p1868_p0, %p308_p9 }
  0x33   : > { %s1597_s25 = sand.u32 (!%p309_p2), 1, %s1427_s12  }
  0x34   : > { %312 = sbr.rel (%p309_p2) target bundleno = 1359 (0x54f), region = 56  ;;  %s315_s30 = scalar_lea.sflag (!%p309_p2), [#allocation4], %s1597_s25 }
  0x35   : > { %s1169_s23 = smul.u32 (!%p309_p2), 192, %s1597_s25 }
  0x37   : > { %s1601_s18 = scalar_lea.vmem (!%p309_p2), [#allocation3], %s1169_s23 }
  0x3b   : > { %1414 = dma.done.wait (%p1536_p6), %s315_s30, 3072  }
  0x3c   : > { %1416 = vsyncadd (%p1536_p6), %s315_s30, 4294964224  ;;  %v1441_v1 = vmov 0   ;;  %v357_v2 = vld [vmem:[%s1601_s18 + $0x8] sm:$0xff]  ;;  %v359_v3 = vld [vmem:[%s1601_s18 + $0x18] sm:$0xff]  ;;  %vm451_vm0 = vcmask 261120   ;;  %vm664_vm1 = vcmask 130048  }
  0x3d   : > { %493 = vmatprep.mubr.bf16.mxu0 %v1441_v1  ;;  %1221 = vset.pattern.permute.xlu0 %v1441_v1  ;;  %v356_v4 = vld [vmem:[%s1601_s18] sm:$0xff]  ;;  %v403_v5 = vpack.c.bf16 %v359_v3, %v357_v2  ;;  %v358_v6 = vld [vmem:[%s1601_s18 + $0x10] sm:$0xff]  ;;  %v361_v7 = vld [vmem:[%s1601_s18 + $0x28] sm:$0xff]  ;;  %s1167_s27 = sshll.u32 %s1518_s8, 5  ;;  %s1022_s10 = scalar_lea.sflag [#allocation5], %s1597_s25 }
  0x3e   : > { %1222 = vset.pattern.permute.xlu1 %v1441_v1  ;;  %638 = vmatprep.mubr.bf16.mxu1 %v1441_v1  ;;  %v363_v8 = vld [vmem:[%s1601_s18 + $0x38] sm:$0xff]  ;;  %v402_v9 = vpack.c.bf16 %v358_v6, %v356_v4  ;;  %v360_v11 = vld [vmem:[%s1601_s18 + $0x20] sm:$0xff]  ;;  %v362_v12 = vld [vmem:[%s1601_s18 + $0x30] sm:$0xff]  ;;  %s1809_s29 = scalar_lea.hbm %s1862_s9, %s1167_s27  ;;  %p1869_p11 = scmp.ne.s32.totalorder %s1865_s21, 0 }
  0x3f   : > { %v405_v10 = vpack.c.bf16 %v363_v8, %v361_v7  ;;  %461 = vmatprep.subr.bf16.mxu0 %v403_v5  ;;  %v404_v13 = vpack.c.bf16 %v362_v12, %v360_v11  ;;  %v388_v14 = vld [vmem:[%s1855_s2] sm:$0xff]  ;;  %v390_v15 = vld [vmem:[%s1855_s2 + $0x10] sm:$0xff]  ;;  %v389_v17 = vld [vmem:[%s1855_s2 + $0x8] sm:$0xff]  ;;  %s1443_s8 = smov [#allocation6]  }
  0x40   : > { %462 = vmatpush1.bf16.msra.mxu0 %v402_v9  ;;  %408 = vperm.xlu0 %1221, %v388_v14   ;;  %v1628_v16 = vld [vmem:[%s1854_s1] sm:$0xff]   ;;  %v391_v18 = vld [vmem:[%s1855_s2 + $0x18] sm:$0xff]  ;;  %v393_v20 = vld [vmem:[%s1855_s2 + $0x28] sm:$0xff]  ;;  %s1373_s24 = sshll.u32 %s1443_s8, 4  ;;  %s1374_s24 = int_to_ptr.vmem [resolvable:$false] %s1373_s24 }
  0x41   : > { %463 = vmatprep.subr.bf16.mxu0 %v405_v10  ;;  %418 = vperm.xlu1 %1222, %v390_v15   ;;  %v392_v19 = vld [vmem:[%s1855_s2 + $0x20] sm:$0xff]  ;;  %v1648_v21 = vld [vmem:[%s1854_s1 + $0x8] sm:$0xff]   ;;  %v1668_v26 = vld [vmem:[%s1854_s1 + $0x10] sm:$0xff]   ;;  %s1375_s17 = scalar_lea.vmem %s1374_s24, 64 }
  0x42   : > { %v396_v22 = vld [vmem:[%s1857_s4] sm:$0xff]  ;;  %v397_v23 = vld [vmem:[%s1857_s4 + $0x8] sm:$0xff]  ;;  %v1693_v15 = vld [vmem:[%s1601_s18 + $0x50] sm:$0xff] }
  0x43   : > { %v399_v24 = vld [vmem:[%s1859_s6] sm:$0xff] }
  0x44   : > { %464 = vmatpush1.bf16.msra.mxu0 %v404_v13  ;;  %413 = vperm.xlu0 %1221, %v389_v17   ;;  %v400_v25 = vld [vmem:[%s1860_s7] sm:$0xff] }
  0x45   : > { %423 = vperm.xlu1 %1222, %v391_v18   ;;  %v401_v27 = vld [vmem:[#allocation2] sm:$0x1]  ;;  %v1690_v14 = vld [vmem:[%s1601_s18 + $0x40] sm:$0xff]  ;;  %v1696_v18 = vld [vmem:[%s1601_s18 + $0x48] sm:$0xff] }
  0x47   : > { %1132 = vmatmul.mubr.msk.bf16.vlgmr.msra.gmra.mrb[0].mxu0 %vm451_vm0, %v1628_v16 }
  0x48   : > { %503 = vmatprep.mubr.bf16.mxu0 %v1441_v1  ;;  %428 = vperm.xlu0 %1221, %v392_v19   ;;  %v1699_v19 = vld [vmem:[%s1601_s18 + $0x58] sm:$0xff] }
  0x49   : > { %433 = vperm.xlu1 %1222, %v393_v20  }
  0x4c   : > { %590 = vperm.xlu0 %1221, %v396_v22  }
  0x4d   : > { %595 = vperm.xlu1 %1222, %v397_v23  }
  0x4f   : > { %1133 = vmatmul.mubr.msk.bf16.gmra.mrb[4].mxu0 %vm451_vm0, %v1648_v21 }
  0x50   : > { %513 = vmatprep.mubr.bf16.mxu0 %v1441_v1  ;;  %661 = vperm.xlu0 %1221, %v399_v24  }
  0x51   : > { %713 = vperm.xlu1 %1222, %v400_v25  }
  0x54   : > { %732 = vperm.xlu0 %1221, %v401_v27  }
  0x57   : > { %1134 = vmatmul.mubr.msk.bf16.gmra.mrb[8].mxu0 %vm451_vm0, %v1668_v26 }
  0x58   : > { %904 = vmatprep.mubr.bf16.mxu0 %v1441_v1 }
  0xbf   : > { %v1673_v28 = vpop.permute.xlu0 %408 }
  0xc0   : > { %v1680_v38 = vpop.permute.xlu1 %418 }
  0xc3   : > { %v1676_v32 = vpop.permute.xlu0 %413 }
  0xc4   : > { %v1684_v46 = vpop.permute.xlu1 %423 }
 0x11a   : > { %v495_v29 = vpop.f32.mrb[0].mxu0 }
 0x11b   : > { %v496_v30 = vadd.f32 %v495_v29, %v1673_v28  ;;  %v497_v31 = vpop.f32.mrb[1].mxu0 }
 0x11c   : > { %v498_v33 = vadd.f32 %v497_v31, %v1673_v28  ;;  %v499_v34 = vpop.f32.mrb[2].mxu0 }
 0x11d   : > { %v1135_v35 = vmul.f32 -1.442695, %v496_v30  ;;  %v500_v36 = vadd.f32 %v499_v34, %v1676_v32  ;;  %v501_v37 = vpop.f32.mrb[3].mxu0  ;;  %v1709_v34 = vld [vmem:[%s1601_s18 + $0x70] sm:$0xff] }
 0x11e   : > { %v1136_v39 = vmul.f32 -1.442695, %v498_v33  ;;  %v502_v40 = vadd.f32 %v501_v37, %v1676_v32  ;;  %v1706_v33 = vld [vmem:[%s1601_s18 + $0x60] sm:$0xff]  ;;  %v1715_v37 = vld [vmem:[%s1601_s18 + $0x78] sm:$0xff] }
 0x11f   : > { %1227 = vpow2.f32 %v1135_v35  ;;  %v1137_v41 = vmul.f32 -1.442695, %v500_v36  ;;  %v1712_v36 = vld [vmem:[%s1601_s18 + $0x68] sm:$0xff] }
 0x120   : > { %1229 = vpow2.f32 %v1136_v39  ;;  %v1138_v42 = vmul.f32 -1.442695, %v502_v40 }
 0x121   : > { %1231 = vpow2.f32 %v1137_v41 }
 0x122   : > { %1233 = vpow2.f32 %v1138_v42  ;;  %v505_v43 = vpop.f32.mrb[4].mxu0 }
 0x123   : > { %v506_v44 = vadd.f32 %v505_v43, %v1680_v38  ;;  %v507_v45 = vpop.f32.mrb[5].mxu0 }
 0x124   : > { %v508_v47 = vadd.f32 %v507_v45, %v1680_v38  ;;  %v509_v48 = vpop.f32.mrb[6].mxu0 }
 0x125   : > { %v1139_v49 = vmul.f32 -1.442695, %v506_v44  ;;  %v510_v50 = vadd.f32 %v509_v48, %v1684_v46  ;;  %v511_v51 = vpop.f32.mrb[7].mxu0  ;;  %v1724_v48 = vld [vmem:[%s1856_s3] sm:$0xff]  }
 0x126   : > { %v1140_v52 = vmul.f32 -1.442695, %v508_v47  ;;  %v512_v53 = vadd.f32 %v511_v51, %v1684_v46  ;;  %v1732_v51 = vpop.permute.xlu1 %433 }
 0x127   : > { %1235 = vpow2.f32 %v1139_v49  ;;  %v1141_v54 = vmul.f32 -1.442695, %v510_v50  ;;  %v1729_v49 = vpop.permute.xlu0 %428 }
 0x128   : > { %1237 = vpow2.f32 %v1140_v52  ;;  %v1142_v55 = vmul.f32 -1.442695, %v512_v53 }
 0x129   : > { %v1228_v56 = vpop.eup %1227  ;;  %1239 = vpow2.f32 %v1141_v54 }
 0x12a   : > { %v1230_v57 = vpop.eup %1229  ;;  %v548_v58 = vadd.f32 1.0, %v1228_v56  ;;  %1241 = vpow2.f32 %v1142_v55  ;;  %v515_v59 = vpop.f32.mrb[8].mxu0 }
 0x12b   : > { %v1232_v60 = vpop.eup %1231  ;;  %v549_v61 = vadd.f32 1.0, %v1230_v57  ;;  %v517_v62 = vpop.f32.mrb[9].mxu0  ;;  %v516_v50 = vadd.f32 %v515_v59, %v1729_v49 }
 0x12c   : > { %v1234_v63 = vpop.eup %1233  ;;  %1243 = vrcp.f32 %v548_v58  ;;  %v550_v0 = vadd.f32 1.0, %v1232_v60  ;;  %v519_v2 = vpop.f32.mrb[10].mxu0  ;;  %v518_v52 = vadd.f32 %v517_v62, %v1729_v49 }
 0x12d   : > { %1245 = vrcp.f32 %v549_v61  ;;  %v551_v3 = vadd.f32 1.0, %v1234_v63  ;;  %v521_v4 = vpop.f32.mrb[11].mxu0  ;;  %v520_v53 = vadd.f32 %v519_v2, %v1732_v51  ;;  %v1737_v55 = vpop.permute.xlu0 %590 }
 0x12e   : > { %1247 = vrcp.f32 %v550_v0  ;;  %v522_v54 = vadd.f32 %v521_v4, %v1732_v51  ;;  %v1740_v60 = vpop.permute.xlu1 %595 }
 0x12f   : > { %1249 = vrcp.f32 %v551_v3 }
 0x131   : > { %v1236_v5 = vpop.eup %1235 }
 0x132   : > { %v1238_v6 = vpop.eup %1237  ;;  %v552_v7 = vadd.f32 1.0, %v1236_v5 }
 0x133   : > { %v1240_v8 = vpop.eup %1239  ;;  %v553_v9 = vadd.f32 1.0, %v1238_v6 }
 0x134   : > { %v1242_v10 = vpop.eup %1241  ;;  %1251 = vrcp.f32 %v552_v7  ;;  %v554_v11 = vadd.f32 1.0, %v1240_v8 }
 0x135   : > { %1253 = vrcp.f32 %v553_v9  ;;  %v555_v12 = vadd.f32 1.0, %v1242_v10 }
 0x136   : > { %v1244_v13 = vpop.eup %1243  ;;  %1255 = vrcp.f32 %v554_v11 }
 0x137   : > { %v1246_v17 = vpop.eup %1245  ;;  %1257 = vrcp.f32 %v555_v12  ;;  %v576_v23 = vmul.f32 %v1244_v13, %v1690_v14 }
 0x138   : > { %v1248_v20 = vpop.eup %1247  ;;  %v577_v25 = vmul.f32 %v1246_v17, %v1696_v18  ;;  %1259 = vtanh.f32 %v516_v50 }
 0x139   : > { %v1250_v22 = vpop.eup %1249  ;;  %v578_v24 = vmul.f32 %v1248_v20, %v1693_v15  ;;  %1261 = vtanh.f32 %v518_v52 }
 0x13a   : > { %v579_v27 = vmul.f32 %v1250_v22, %v1699_v19  ;;  %1263 = vtanh.f32 %v520_v53  ;;  %v742_v22 = vpack.c.bf16 %v1699_v19, %v1696_v18  ;;  %v743_v18 = vpack.c.bf16 %v1709_v34, %v1706_v33 }
 0x13b   : > { %v584_v29 = vpack.c.bf16 %v578_v24, %v576_v23  ;;  %1265 = vtanh.f32 %v522_v54  ;;  %v741_v23 = vpack.c.bf16 %v1693_v15, %v1690_v14  ;;  %v1752_v24 = vld [vmem:[%s1858_s5] sm:$0xf] }
 0x13c   : > { %v585_v30 = vpack.c.bf16 %v579_v27, %v577_v25  ;;  %v744_v25 = vpack.c.bf16 %v1715_v37, %v1712_v36 }
 0x13e   : > { %v1252_v31 = vpop.eup %1251  ;;  %606 = vmatprep.subr.bf16.mxu1 %v585_v30 }
 0x13f   : > { %v1254_v35 = vpop.eup %1253  ;;  %607 = vmatpush1.bf16.msra.mxu1 %v584_v29  ;;  %v580_v41 = vmul.f32 %v1252_v31, %v1706_v33 }
 0x140   : > { %v1256_v39 = vpop.eup %1255  ;;  %v581_v43 = vmul.f32 %v1254_v35, %v1712_v36 }
 0x141   : > { %v1258_v40 = vpop.eup %1257  ;;  %v582_v42 = vmul.f32 %v1256_v39, %v1709_v34 }
 0x142   : > { %v583_v44 = vmul.f32 %v1258_v40, %v1715_v37  ;;  %v1260_v2 = vpop.eup %1259 }
 0x143   : > { %v586_v45 = vpack.c.bf16 %v582_v42, %v580_v41  ;;  %v1262_v3 = vpop.eup %1261 }
 0x144   : > { %v587_v47 = vpack.c.bf16 %v583_v44, %v581_v43  ;;  %v1264_v4 = vpop.eup %1263 }
 0x145   : > { %v1266_v5 = vpop.eup %1265 }
 0x146   : > { %608 = vmatprep.subr.bf16.mxu1 %v587_v47 }
 0x147   : > { %609 = vmatpush1.bf16.msra.mxu1 %v586_v45 }
 0x14a   : > { %1144 = vmatmul.mubr.msk.bf16.vlgmr.msra.gmra.mrb[0].mxu1 %vm451_vm0, %v1724_v48 }
 0x14b   : > { %700 = vmatprep.mubr.bf16.mxu1 %v1441_v1 }
 0x21d   : > { %v640_v56 = vpop.f32.mrb[0].mxu1 }
 0x21e   : > { %v641_v57 = vadd.f32 %v640_v56, %v1737_v55  ;;  %v642_v58 = vpop.f32.mrb[1].mxu1 }
 0x21f   : > { %v643_v59 = vadd.f32 %v642_v58, %v1737_v55  ;;  %v644_v61 = vpop.f32.mrb[2].mxu1 }
 0x220   : > { %1267 = vtanh.f32 %v641_v57  ;;  %v645_v62 = vadd.f32 %v644_v61, %v1740_v60  ;;  %v646_v63 = vpop.f32.mrb[3].mxu1 }
 0x221   : > { %1269 = vtanh.f32 %v643_v59  ;;  %v647_v0 = vadd.f32 %v646_v63, %v1740_v60 }
 0x222   : > { %1271 = vtanh.f32 %v645_v62 }
 0x223   : > { %1273 = vtanh.f32 %v647_v0 }
 0x22a   : > { %v1268_v6 = vpop.eup %1267 }
 0x22b   : > { %v1270_v7 = vpop.eup %1269  ;;  %v653_v8 = vmul.f32 %v1268_v6, %v1260_v2 }
 0x22c   : > { %v1272_v9 = vpop.eup %1271  ;;  %v654_v10 = vmul.f32 %v1270_v7, %v1262_v3 }
 0x22d   : > { %v1274_v11 = vpop.eup %1273  ;;  %v655_v12 = vmul.f32 %v1272_v9, %v1264_v4 }
 0x22e   : > { %v656_v13 = vmul.f32 %v1274_v11, %v1266_v5 }
 0x22f   : > { %v657_v17 = vpack.c.bf16 %v655_v12, %v653_v8  ;;  %v1121_v12 = vld [vmem:[%s1601_s18 + $0x80] sm:$0xff] }
 0x230   : > { %v658_v20 = vpack.c.bf16 %v656_v13, %v654_v10  ;;  %v1123_v13 = vld [vmem:[%s1601_s18 + $0x90] sm:$0xff] }
 0x232   : > { %668 = vmatprep.subr.bf16.mxu1 %v658_v20  ;;  %v1122_v20 = vld [vmem:[%s1601_s18 + $0x88] sm:$0xff] }
 0x233   : > { %669 = vmatpush1.bf16.msra.mxu1 %v657_v17 }
 0x234   : > { %745 = vmatprep.subr.bf16.mxu1 %v742_v22  ;;  %v1124_v22 = vld [vmem:[%s1601_s18 + $0x98] sm:$0xff] }
 0x236   : > { %1145 = vmatmul.mubr.msk.bf16.vlgmr.msra.gmra.mrb[4].mxu1 %vm664_vm1, %v1752_v24 }
 0x237   : > { %746 = vmatpush1.bf16.msra.mxu1 %v741_v23  ;;  %777 = vmatprep.mubr.bf16.mxu1 %v1441_v1 }
 0x238   : > { %747 = vmatprep.subr.bf16.mxu1 %v744_v25 }
 0x23b   : > { %748 = vmatpush1.bf16.msra.mxu1 %v743_v18 }
 0x23e   : > { %1146 = vmatmul.mubr.msk.bf16.vlgmr.msra.gmra.mrb[8].mxu1 %vm451_vm0, %v1628_v16 }
 0x23f   : > { %787 = vmatprep.mubr.bf16.mxu1 %v1441_v1 }
 0x246   : > { %1147 = vmatmul.mubr.msk.bf16.gmra.mrb[12].mxu1 %vm451_vm0, %v1648_v21 }
 0x247   : > { %797 = vmatprep.mubr.bf16.mxu1 %v1441_v1 }
 0x24e   : > { %1148 = vmatmul.mubr.msk.bf16.gmra.mrb[16].mxu1 %vm451_vm0, %v1668_v26 }
 0x309   : > { %v1769_v14 = vpop.f32.mrb[4].mxu1 }
 0x30a   : > { %v1771_v15 = vpop.f32.mrb[5].mxu1 }
 0x30b   : > { %v706_v19 = vpop.f32.mrb[6].mxu1 }
 0x30c   : > { %v707_v27 = vpop.f32.mrb[7].mxu1 }
 0x311   : > { %v779_v29 = vpop.f32.mrb[8].mxu1 }
 0x312   : > { %v780_v30 = vadd.f32 %v779_v29, %v1673_v28  ;;  %v781_v16 = vpop.f32.mrb[9].mxu1 }
 0x313   : > { %v782_v31 = vadd.f32 %v781_v16, %v1673_v28  ;;  %v783_v33 = vpop.f32.mrb[10].mxu1 }
 0x314   : > { %v1149_v34 = vmul.f32 -1.442695, %v780_v30  ;;  %v784_v21 = vadd.f32 %v783_v33, %v1676_v32  ;;  %v785_v35 = vpop.f32.mrb[11].mxu1  ;;  %v1125_v33 = vld [vmem:[%s1601_s18 + $0xa0] sm:$0xff] }
 0x315   : > { %v1150_v36 = vmul.f32 -1.442695, %v782_v31  ;;  %v786_v26 = vadd.f32 %v785_v35, %v1676_v32  ;;  %v1126_v35 = vld [vmem:[%s1601_s18 + $0xa8] sm:$0xff] }
 0x316   : > { %1275 = vpow2.f32 %v1149_v34  ;;  %v1151_v37 = vmul.f32 -1.442695, %v784_v21  ;;  %v1127_v34 = vld [vmem:[%s1601_s18 + $0xb0] sm:$0xff] }
 0x317   : > { %1277 = vpow2.f32 %v1150_v36  ;;  %v1152_v39 = vmul.f32 -1.442695, %v786_v26  ;;  %v1128_v36 = vld [vmem:[%s1601_s18 + $0xb8] sm:$0xff]  ;;  %s1112_s18 = sshll.u32 %s1597_s25, 1 }
 0x318   : > { %1279 = vpow2.f32 %v1151_v37  ;;  %s352_s23 = scalar_lea.vmem [#allocation6], %s1112_s18 }
 0x319   : > { %1281 = vpow2.f32 %v1152_v39  ;;  %v789_v40 = vpop.f32.mrb[12].mxu1  ;;  %s1036_s30 = sshll.u32 %s352_s23, 4  ;;  %s1811_s30 = int_to_ptr.vmem [resolvable:$true] %s1036_s30 }
 0x31a   : > { %v790_v41 = vadd.f32 %v789_v40, %v1680_v38  ;;  %v791_v42 = vpop.f32.mrb[13].mxu1  ;;  %s1369_s15 = scalar_lea.vmem %s1811_s30, 32  ;;  %p1376_p4 = scmp.lt.s32.totalorder %s1811_s30, %s1374_s24 }
 0x31b   : > { %v792_v28 = vadd.f32 %v791_v42, %v1680_v38  ;;  %v793_v43 = vpop.f32.mrb[14].mxu1  ;;  %p1370_p6 = scmp.ne.s32.totalorder %s1811_s30, %s1369_s15  ;;  %p1377_p10 = scmp.lt.s32.totalorder %s1375_s17, %s1369_s15 }
 0x31c   : > { %v1153_v44 = vmul.f32 -1.442695, %v790_v41  ;;  %v794_v45 = vadd.f32 %v793_v43, %v1684_v46  ;;  %v795_v47 = vpop.f32.mrb[15].mxu1 }
 0x31d   : > { %v1154_v50 = vmul.f32 -1.442695, %v792_v28  ;;  %v796_v32 = vadd.f32 %v795_v47, %v1684_v46  ;;  %p1371_p12 = pnand %p1370_p6, %p1869_p11  ;;  %p1378_p1 = por %p1377_p10, %p1376_p4 }
 0x31e   : > { %1283 = vpow2.f32 %v1153_v44  ;;  %v1155_v52 = vmul.f32 -1.442695, %v794_v45 }
 0x31f   : > { %1285 = vpow2.f32 %v1154_v50  ;;  %v1156_v53 = vmul.f32 -1.442695, %v796_v32  ;;  %p1372_p13 = pneg %p1371_p12 }
 0x320   : > { %v1276_v54 = vpop.eup %1275  ;;  %1287 = vpow2.f32 %v1155_v52 }
 0x321   : > { %v1278_v56 = vpop.eup %1277  ;;  %v832_v57 = vadd.f32 1.0, %v1276_v54  ;;  %1289 = vpow2.f32 %v1156_v53  ;;  %v799_v58 = vpop.f32.mrb[16].mxu1  ;;  %p1379_p3 = pnand %p1378_p1, %p1372_p13 }
 0x322   : > { %v1280_v59 = vpop.eup %1279  ;;  %v833_v38 = vadd.f32 1.0, %v1278_v56  ;;  %v801_v61 = vpop.f32.mrb[17].mxu1  ;;  %v800_v44 = vadd.f32 %v799_v58, %v1729_v49 }
 0x323   : > { %v1282_v62 = vpop.eup %1281  ;;  %1291 = vrcp.f32 %v832_v57  ;;  %v834_v63 = vadd.f32 1.0, %v1280_v59  ;;  %v803_v0 = vpop.f32.mrb[18].mxu1  ;;  %v802_v45 = vadd.f32 %v801_v61, %v1729_v49 }
 0x324   : > { %1293 = vrcp.f32 %v833_v38  ;;  %v835_v2 = vadd.f32 1.0, %v1282_v62  ;;  %v805_v46 = vpop.f32.mrb[19].mxu1  ;;  %v804_v47 = vadd.f32 %v803_v0, %v1732_v51 }
 0x325   : > { %1295 = vrcp.f32 %v834_v63  ;;  %v806_v50 = vadd.f32 %v805_v46, %v1732_v51 }
 0x326   : > { %1297 = vrcp.f32 %v835_v2 }
 0x328   : > { %v1284_v3 = vpop.eup %1283 }
 0x329   : > { %v1286_v4 = vpop.eup %1285  ;;  %v836_v5 = vadd.f32 1.0, %v1284_v3 }
 0x32a   : > { %v1288_v6 = vpop.eup %1287  ;;  %v837_v7 = vadd.f32 1.0, %v1286_v4 }
 0x32b   : > { %v1290_v8 = vpop.eup %1289  ;;  %1299 = vrcp.f32 %v836_v5  ;;  %v838_v9 = vadd.f32 1.0, %v1288_v6 }
 0x32c   : > { %1301 = vrcp.f32 %v837_v7  ;;  %v839_v10 = vadd.f32 1.0, %v1290_v8 }
 0x32d   : > { %v1292_v11 = vpop.eup %1291  ;;  %1303 = vrcp.f32 %v838_v9  ;;  %v714_v9 = vpop.permute.xlu1 %713 }
 0x32e   : > { %v1294_v17 = vpop.eup %1293  ;;  %1305 = vrcp.f32 %v839_v10  ;;  %v860_v18 = vmul.f32 %v1292_v11, %v1121_v12 }
 0x32f   : > { %v1296_v23 = vpop.eup %1295  ;;  %v861_v27 = vmul.f32 %v1294_v17, %v1122_v20  ;;  %1307 = vtanh.f32 %v800_v44 }
 0x330   : > { %v1298_v25 = vpop.eup %1297  ;;  %v862_v19 = vmul.f32 %v1296_v23, %v1123_v13  ;;  %1309 = vtanh.f32 %v802_v45 }
 0x331   : > { %v863_v29 = vmul.f32 %v1298_v25, %v1124_v22  ;;  %1311 = vtanh.f32 %v804_v47 }
 0x332   : > { %v868_v30 = vpack.c.bf16 %v862_v19, %v860_v18  ;;  %1313 = vtanh.f32 %v806_v50 }
 0x333   : > { %v869_v16 = vpack.c.bf16 %v863_v29, %v861_v27 }
 0x335   : > { %v1300_v31 = vpop.eup %1299  ;;  %872 = vmatprep.subr.bf16.mxu0 %v869_v16 }
 0x336   : > { %v1302_v21 = vpop.eup %1301  ;;  %873 = vmatpush1.bf16.msra.mxu0 %v868_v30  ;;  %v864_v39 = vmul.f32 %v1300_v31, %v1125_v33  ;;  %v735_v30 = vlaneseq }
 0x337   : > { %v1304_v26 = vpop.eup %1303  ;;  %v865_v41 = vmul.f32 %v1302_v21, %v1126_v35 }
 0x338   : > { %v1306_v37 = vpop.eup %1305  ;;  %v866_v40 = vmul.f32 %v1304_v26, %v1127_v34  ;;  %vm1018_vm2 = vcmp.lt.s32.totalorder %v735_v30, 256 }
 0x339   : > { %v867_v42 = vmul.f32 %v1306_v37, %v1128_v36  ;;  %v1308_v51 = vpop.eup %1307  ;;  %v736_v36 = vshrl.u32 %v735_v30, 7 }
 0x33a   : > { %v870_v28 = vpack.c.bf16 %v866_v40, %v864_v39  ;;  %v1310_v57 = vpop.eup %1309 }
 0x33b   : > { %v871_v43 = vpack.c.bf16 %v867_v42, %v865_v41  ;;  %v1312_v58 = vpop.eup %1311 }
 0x33c   : > { %v1314_v59 = vpop.eup %1313 }
 0x33d   : > { %874 = vmatprep.subr.bf16.mxu0 %v871_v43 }
 0x33e   : > { %875 = vmatpush1.bf16.msra.mxu0 %v870_v28  ;;  %v737_v28 = vsub.s32 0, %v736_v36 }
 0x341   : > { %1157 = vmatmul.mubr.msk.bf16.vlgmr.msra.gmra.mrb[12].mxu0 %vm451_vm0, %v1724_v48 }
 0x342   : > { %957 = vmatprep.mubr.bf16.mxu0 %v1441_v1 }
 0x414   : > { %v906_v32 = vpop.f32.mrb[12].mxu0 }
 0x415   : > { %v907_v52 = vadd.f32 %v906_v32, %v1737_v55  ;;  %v908_v53 = vpop.f32.mrb[13].mxu0 }
 0x416   : > { %v909_v48 = vadd.f32 %v908_v53, %v1737_v55  ;;  %v910_v54 = vpop.f32.mrb[14].mxu0 }
 0x417   : > { %1315 = vtanh.f32 %v907_v52  ;;  %v911_v1 = vadd.f32 %v910_v54, %v1740_v60  ;;  %v912_v56 = vpop.f32.mrb[15].mxu0 }
 0x418   : > { %1317 = vtanh.f32 %v909_v48  ;;  %v913_v49 = vadd.f32 %v912_v56, %v1740_v60  ;;  %v662_v60 = vpop.permute.xlu0 %661 }
 0x419   : > { %1319 = vtanh.f32 %v911_v1  ;;  %v703_v5 = vadd.f32 %v1769_v14, %v662_v60  ;;  %v705_v6 = vadd.f32 %v1771_v15, %v662_v60 }
 0x41a   : > { %1321 = vtanh.f32 %v913_v49 }
 0x41b   : > { %1323 = vtanh.f32 %v703_v5 }
 0x41c   : > { %1325 = vtanh.f32 %v705_v6  ;;  %v733_v44 = vpop.permute.xlu0 %732 }
 0x41d   : > { %v738_v53 = vrot.slane %v733_v44, %v737_v28 }
 0x421   : > { %v1316_v38 = vpop.eup %1315 }
 0x422   : > { %v1318_v61 = vpop.eup %1317  ;;  %v919_v62 = vmul.f32 %v1316_v38, %v1308_v51 }
 0x423   : > { %v1320_v63 = vpop.eup %1319  ;;  %v920_v0 = vmul.f32 %v1318_v61, %v1310_v57 }
 0x424   : > { %v1322_v55 = vpop.eup %1321  ;;  %v921_v2 = vmul.f32 %v1320_v63, %v1312_v58 }
 0x425   : > { %v922_v46 = vmul.f32 %v1322_v55, %v1314_v59  ;;  %v1324_v7 = vpop.eup %1323  ;;  %v1442_v55 = vmov 1966171168  }
 0x426   : > { %v923_v3 = vpack.c.bf16 %v921_v2, %v919_v62  ;;  %v1326_v8 = vpop.eup %1325  ;;  %v716_v10 = vmul.f32 %v1324_v7, %v714_v9  ;;  %v1002_v2 = vunpack.c.l.s4 %v1442_v55 }
 0x427   : > { %v924_v4 = vpack.c.bf16 %v922_v46, %v920_v0  ;;  %v717_v12 = vmul.f32 %v1326_v8, %v714_v9 }
 0x428   : > { %v1003_v46 = vunpack.c.0.s8 %v1002_v2 }
 0x429   : > { %925 = vmatprep.subr.bf16.mxu0 %v924_v4  ;;  %v724_v25 = vrot.slane %v717_v12, 4 }
 0x42a   : > { %926 = vmatpush1.bf16.msra.mxu0 %v923_v3  ;;  %v1006_v4 = vsub.s32 %v1003_v46, %v736_v36 }
 0x42b   : > { %v725_v18 = vadd.f32 %v724_v25, %v717_v12 }
 0x42d   : > { %1158 = vmatmul.mubr.msk.bf16.vlgmr.msra.gmra.mrb[16].mxu0 %vm664_vm1, %v1752_v24  ;;  %v718_v24 = vrot.slane %v716_v10, 4  ;;  %v726_v27 = vrot.slane %v725_v18, 2 }
 0x42f   : > { %v719_v14 = vadd.f32 %v718_v24, %v716_v10  ;;  %v727_v21 = vadd.f32 %v726_v27, %v725_v18 }
 0x431   : > { %v720_v15 = vrot.slane %v719_v14, 2  ;;  %v728_v41 = vrot.slane %v727_v21, 1 }
 0x433   : > { %v721_v33 = vadd.f32 %v720_v15, %v719_v14  ;;  %v729_v32 = vadd.f32 %v728_v41, %v727_v21 }
 0x435   : > { %v722_v39 = vrot.slane %v721_v33, 1  ;;  %v740_v49 = vadd.f32 %v738_v53, %v729_v32 }
 0x437   : > { %v723_v47 = vadd.f32 %v722_v39, %v721_v33 }
 0x439   : > { %v739_v1 = vadd.f32 %v738_v53, %v723_v47 }
 0x500   : > { %v959_v11 = vpop.f32.mrb[16].mxu0 }
 0x501   : > { %v960_v13 = vadd.f32 %v959_v11, %v662_v60  ;;  %v961_v17 = vpop.f32.mrb[17].mxu0 }
 0x502   : > { %v962_v20 = vadd.f32 %v961_v17, %v662_v60  ;;  %v963_v22 = vpop.f32.mrb[18].mxu0 }
 0x503   : > { %1327 = vtanh.f32 %v960_v13  ;;  %v964_v23 = vpop.f32.mrb[19].mxu0 }
 0x504   : > { %1329 = vtanh.f32 %v962_v20 }
 0x50d   : > { %v1328_v19 = vpop.eup %1327 }
 0x50e   : > { %v1330_v29 = vpop.eup %1329  ;;  %v968_v16 = vmul.f32 %v1328_v19, %v714_v9 }
 0x50f   : > { %v969_v31 = vmul.f32 %v1330_v29, %v714_v9 }
 0x510   : > { %v970_v34 = vrot.slane %v968_v16, 4 }
 0x511   : > { %v976_v35 = vrot.slane %v969_v31, 4 }
 0x512   : > { %v971_v26 = vadd.f32 %v970_v34, %v968_v16 }
 0x513   : > { %v977_v37 = vadd.f32 %v976_v35, %v969_v31 }
 0x514   : > { %v972_v40 = vrot.slane %v971_v26, 2 }
 0x515   : > { %v978_v42 = vrot.slane %v977_v37, 2 }
 0x516   : > { %v973_v43 = vadd.f32 %v972_v40, %v971_v26 }
 0x517   : > { %v979_v45 = vadd.f32 %v978_v42, %v977_v37 }
 0x518   : > { %v974_v50 = vrot.slane %v973_v43, 1 }
 0x519   : > { %v980_v52 = vrot.slane %v979_v45, 1 }
 0x51a   : > { %v975_v48 = vadd.f32 %v974_v50, %v973_v43 }
 0x51b   : > { %v981_v54 = vadd.f32 %v980_v52, %v979_v45 }
 0x51c   : > { %v982_v56 = vadd.f32 %v975_v48, %v738_v53 }
 0x51d   : > { %v983_v51 = vadd.f32 %v981_v54, %v738_v53 }
 0x51e   : > { %v984_v57 = vmax.f32 %v739_v1, %v982_v56 }
 0x51f   : > { %v985_v58 = vmax.f32 %v740_v49, %v983_v51 }
 0x520   : > { %v1159_v59 = vmul.f32 -1.442695, %v984_v57 }
 0x521   : > { %v1160_v38 = vmul.f32 -1.442695, %v985_v58 }
 0x522   : > { %1331 = vpow2.f32 %v1159_v59 }
 0x523   : > { %1333 = vpow2.f32 %v1160_v38 }
 0x52c   : > { %v1332_v61 = vpop.eup %1331 }
 0x52d   : > { %v1334_v62 = vpop.eup %1333  ;;  %v992_v63 = vadd.f32 1.0, %v1332_v61 }
 0x52e   : > { %v993_v0 = vadd.f32 1.0, %v1334_v62 }
 0x52f   : > { %1335 = vrcp.f32 %v992_v63 }
 0x530   : > { %1337 = vrcp.f32 %v993_v0 }
 0x539   : > { %v1336_v3 = vpop.eup %1335 }
 0x53a   : > { %v1338_v60 = vpop.eup %1337 }
 0x53b   : > { %v1000_v5 = vcombine.low %v1336_v3, %v1338_v60 }
 0x53d   : > { %v1007_v6 = vrot.slane %v1000_v5, %v1006_v4 }
 0x53f   : > { %v1014_v7 = vrot.slane %v1007_v6, %v1006_v4 }
 0x541   : > { %1020 = vst.msk [vmem:[%s352_s23] sm:$0x3] %vm1018_vm2, %v1014_v7 }
 0x542   : > { %1382 = shalt.err (!%p1379_p3)
}
 0x543   : > { %s1383_s25 = scalar_lea.hbm %s1809_s29, 32  ;;  %s1387_s27 = scalar_lea.hbm %s1862_s9, 64 }
 0x544   : > { %p1384_p5 = scmp.ne.s32.totalorder %s1809_s29, %s1383_s25  ;;  %p1388_p9 = scmp.lt.u32.totalorder %s1809_s29, %s1862_s9 }
 0x545   : > { %p1389_p0 = scmp.lt.u32.totalorder %s1387_s27, %s1383_s25  ;;  %p1391_p6 = scmp.lt.u32.totalorder %s1383_s25, %s1809_s29 }
 0x546   : > { %p1385_p7 = pnand %p1384_p5, %p1869_p11 }
 0x547   : > { %p1390_p2 = por %p1389_p0, %p1388_p9 }
 0x548   : > { %p1386_p8 = pneg %p1385_p7 }
 0x549   : > { %p1392_p12 = por %p1391_p6, %p1390_p2 }
 0x54b   : > { %p1393_p13 = pnand %p1392_p12, %p1386_p8 }
 0x54d   : > { %1396 = shalt.err (!%p1393_p13)
}
 0x54e   : > { %1172 = dma.vmem_to_hbm [thread:$0]  (%p1869_p11), %s1811_s30, 32, %s1809_s29, %s1022_s10  }
 0x54f PF: > { %s1048_s28 = sand.u32 1, %s1423_s11   ;;  %p1870_p4 = scmp.ne.s32.totalorder %s1866_s22, 0 }
 0x550   : > { %p1871_p10 = scmp.ge.s32.totalorder %s1435_s14, 2  ;;  %s1049_s15 = scalar_lea.sflag [#allocation5], %s1048_s28 }
 0x552   : > { %p1179_p1 = pnand %p1871_p10, %p1870_p4 }
 0x554   : > { %1418 = dma.done.wait (!%p1179_p1), %s1049_s15, 32  }
 0x555   : > { %1420 = vsyncadd (!%p1179_p1), %s1049_s15, 4294967264  ;;  %p24_p3 = scmp.ge.s32.totalorder %s1522_s16, 4   ;;  %s1872_s11 = smov %s1427_s12 }
 0x556   : > { %s1873_s12 = smov %s1431_s13  ;;  %s1874_s13 = smov %s1534_s19 }
 0x557   : > { %s1875_s14 = smov %s1522_s16  ;;  %26 = sbr.rel (!%p24_p3) target bundleno = 8 (0x8), region = 103 }
 0x55e   :  { %1054 = vsyncpa [#allocation4], 1 }
 0x55f   :  { %1056 = vsyncpa [#allocation4 + $0x1], 1 }
 0x560   :  { %1057 = vsyncpa [#allocation5], 1 }
 0x561   :  { %1059 = vsyncpa [#allocation5 + $0x1], 1 }

</bundles_post_ra>
